<compile_context>
chip_gen: v5e
topology: v5e:2x2
jax: 0.10.0
libtpu: 0.0.40
codegen_flags: <defaults>
</compile_context>

<pallas_src>
import functools

import jax
import jax.numpy as jnp
from jax.experimental import pallas as pl
from jax.experimental.pallas import tpu as pltpu


LEAKY_SLOPE = 0.3   # matches nn.LeakyReLU(0.3) in the source model
H = 128             # hidden width
D_IN = 784          # input features
OUT = 2             # logits


def _leaky_relu(x):
    return jnp.where(x > 0, x, LEAKY_SLOPE * x)


def _round_up(n, m):
    return (n + m - 1) // m * m


def discriminator_kernel(x_ref, w1_ref, ws_ref, bs_ref, o_ref):
    # x_ref : (bm, 784)      f32   batch tile (cast to bf16 here)
    # w1_ref: (784, 128)     bf16  layer-1 weight (resident)
    # ws_ref: (3, 128, 128)  bf16  stacked layer-2/3/4 weights (layer-4 padded)
    # bs_ref: (4, 128)       f32   stacked biases (layer-4 bias padded)
    # o_ref : (bm, 2)        f32   logits
    x = x_ref[...].astype(jnp.bfloat16)

    # Layer 1: Linear(784,128) + LeakyReLU   (Dropout = identity in eval mode)
    h = jnp.dot(x, w1_ref[...], preferred_element_type=jnp.float32)
    h = _leaky_relu(h + bs_ref[0:1, :])

    # Layer 2: Linear(128,128) + LeakyReLU
    h = jnp.dot(h.astype(jnp.bfloat16), ws_ref[1 - 1],
                preferred_element_type=jnp.float32)
    h = _leaky_relu(h + bs_ref[1:2, :])

    # Layer 3: Linear(128,128) + LeakyReLU
    h = jnp.dot(h.astype(jnp.bfloat16), ws_ref[1],
                preferred_element_type=jnp.float32)
    h = _leaky_relu(h + bs_ref[2:3, :])

    # Layer 4: Linear(128,2) — weight zero-padded to 128 columns so the MXU
    # pass stays 128-wide; only the 2 real logit columns are stored.
    out = jnp.dot(h.astype(jnp.bfloat16), ws_ref[2],
                  preferred_element_type=jnp.float32)
    out = out + bs_ref[3:4, :]
    o_ref[...] = out[:, :OUT].astype(o_ref.dtype)

    # TODO(synk): training-mode Dropout(0.5) would use pltpu.prng_seed +
    # pltpu.prng_random_bits to build the in-kernel mask and rescale by 2x.


def pack_params(params):
    """One-time packing of the 8 Linear params into 3 kernel operands."""
    w1, b1, w2, b2, w3, b3, w4, b4 = params
    w1p = w1.astype(jnp.bfloat16)                                   # (784,128)
    w4p = jnp.zeros((H, H), jnp.float32).at[:, :OUT].set(w4)        # pad 2->128
    ws = jnp.stack([w2, w3, w4p]).astype(jnp.bfloat16)              # (3,128,128)
    b4p = jnp.zeros((H,), jnp.float32).at[:OUT].set(b4)
    bs = jnp.stack([b1, b2, b3, b4p]).astype(jnp.float32)           # (4,128)
    return w1p, ws, bs


@functools.partial(jax.jit, static_argnames=("bm",))
def discriminator_forward(x, packed, *, bm=512):
    """x: [B, 784] float32; packed = pack_params(params). Returns [B, 2] f32."""
    w1p, ws, bs = packed
    B, d_in = x.shape
    assert d_in == D_IN

    # Batch tile: multiple of 16 (bf16 sublane packing), never over-padding
    # tiny batches; for larger batches keep >= 2 grid steps so the parallel
    # grid axis can shard across v7x's two TensorCores.
    bm_eff = min(bm, _round_up(B, 16))
    if B >= 256:
        bm_eff = min(bm_eff, max(128, _round_up(pl.cdiv(B, 2), 128)))

    grid = (pl.cdiv(B, bm_eff),)

    return pl.pallas_call(
        discriminator_kernel,
        out_shape=jax.ShapeDtypeStruct((B, OUT), jnp.float32),
        grid_spec=pltpu.PrefetchScalarGridSpec(
            num_scalar_prefetch=0,
            grid=grid,
            in_specs=[
                pl.BlockSpec((bm_eff, D_IN), lambda i: (i, 0)),   # x tile (f32)
                pl.BlockSpec((D_IN, H), lambda i: (0, 0)),        # w1 (resident)
                pl.BlockSpec((3, H, H), lambda i: (0, 0, 0)),     # w2/w3/w4 stack
                pl.BlockSpec((4, H), lambda i: (0, 0)),           # bias stack
            ],
            out_specs=pl.BlockSpec((bm_eff, OUT), lambda i: (i, 0)),
        ),
        compiler_params=pltpu.CompilerParams(
            dimension_semantics=("parallel",)),
    )(x, w1p, ws, bs)


def init_params(key):
    """Deterministic init matching nn.Linear shapes (U(-1/sqrt(fan_in), +))."""
    dims = [(784, 128), (128, 128), (128, 128), (128, 2)]
    params = []
    for (fan_in, fan_out) in dims:
        key, kw, kb = jax.random.split(key, 3)
        bound = 1.0 / jnp.sqrt(jnp.float32(fan_in))
        w = jax.random.uniform(kw, (fan_in, fan_out), jnp.float32, -bound, bound)
        b = jax.random.uniform(kb, (fan_out,), jnp.float32, -bound, bound)
        params.extend([w, b])
    return tuple(params)


def reference_forward(x, params):
    """Pure-JAX reference emulating the kernel numerics (bf16 in, f32 accum)."""
    w1, b1, w2, b2, w3, b3, w4, b4 = params

    def lin(h, w, b):
        return jnp.dot(h.astype(jnp.bfloat16), w.astype(jnp.bfloat16),
                       preferred_element_type=jnp.float32) + b

    h = _leaky_relu(lin(x, w1, b1))
    h = _leaky_relu(lin(h, w2, b2))
    h = _leaky_relu(lin(h, w3, b3))
    return lin(h, w4, b4)


if __name__ == "__main__":
    key = jax.random.PRNGKey(0)
    key, kx1, kx2 = jax.random.split(key, 3)
    params = init_params(key)
    packed = jax.tree_util.tree_map(jax.block_until_ready, pack_params(params))

    # Small batch (shrunk effective tile, single partial block).
    B1 = 8
    x1 = jax.random.normal(kx1, (B1, 784), jnp.float32)
    out1 = jax.block_until_ready(discriminator_forward(x1, packed))
    ref1 = reference_forward(x1, params)
    assert out1.shape == (B1, 2)
    assert jnp.allclose(out1, ref1, atol=2e-2, rtol=2e-2)

    # Non-multiple batch: exercises cdiv grid + masked remainder block + the
    # >=2-grid-step path (two TensorCores on v7x).
    B2 = 300
    x2 = jax.random.normal(kx2, (B2, 784), jnp.float32)
    out2 = jax.block_until_ready(discriminator_forward(x2, packed))
    ref2 = reference_forward(x2, params)
    assert out2.shape == (B2, 2)
    assert jnp.allclose(out2, ref2, atol=2e-2, rtol=2e-2)

    print("KERNEL_OK")
</pallas_src>

<mosaic_0001>
module attributes {stable_mosaic.version = 11 : i64} {
  func.func @discriminator_kernel(%arg0: i32, %arg1: memref<16x784xf32, #tpu.memory_space<vmem>>, %arg2: memref<784x128xbf16, #tpu.memory_space<vmem>>, %arg3: memref<3x128x128xbf16, #tpu.memory_space<vmem>>, %arg4: memref<4x128xf32, #tpu.memory_space<vmem>>, %arg5: memref<16x2xf32, #tpu.memory_space<vmem>>) attributes {dimension_semantics = [#tpu.dimension_semantics<parallel>], iteration_bounds = array<i64: 1>, scalar_prefetch = 0 : i64, scratch_operands = 0 : i64, tpu.core_type = #tpu.core_type<tc>, window_params = [{transform_indices = @transform_0, window_bounds = array<i64: 16, 784>}, {pipeline_mode = #tpu.pipeline_mode<synchronous>, transform_indices = @transform_1, window_bounds = array<i64: 784, 128>}, {pipeline_mode = #tpu.pipeline_mode<synchronous>, transform_indices = @transform_2, window_bounds = array<i64: 3, 128, 128>}, {pipeline_mode = #tpu.pipeline_mode<synchronous>, transform_indices = @transform_3, window_bounds = array<i64: 4, 128>}, {transform_indices = @transform_4, window_bounds = array<i64: 16, 2>}]} {
    %c0 = arith.constant 0 : index
    %c0_0 = arith.constant 0 : index
    %0 = vector.load %arg1[%c0, %c0_0] : memref<16x784xf32, #tpu.memory_space<vmem>>, vector<16x784xf32>
    %1 = arith.truncf %0 : vector<16x784xf32> to vector<16x784xbf16>
    %c0_1 = arith.constant 0 : index
    %c0_2 = arith.constant 0 : index
    %2 = vector.load %arg2[%c0_1, %c0_2] : memref<784x128xbf16, #tpu.memory_space<vmem>>, vector<784x128xbf16>
    %cst = arith.constant dense<0.000000e+00> : vector<16x128xf32>
    %3 = tpu.matmul %1, %2, %cst {dimension_numbers = #tpu.dot_dimension_numbers<[1], [0], [0], [1], [0, 0, 1, 1], [], []>} : vector<16x784xbf16>, vector<784x128xbf16>, vector<16x128xf32> -> vector<16x128xf32>
    %c0_3 = arith.constant 0 : index
    %c0_4 = arith.constant 0 : index
    %4 = vector.load %arg4[%c0_3, %c0_4] : memref<4x128xf32, #tpu.memory_space<vmem>>, vector<1x128xf32>
    %5 = vector.broadcast %4 : vector<1x128xf32> to vector<16x128xf32>
    %6 = arith.addf %3, %5 : vector<16x128xf32>
    %cst_5 = arith.constant 0.000000e+00 : f32
    %7 = vector.broadcast %cst_5 : f32 to vector<16x128xf32>
    %8 = arith.cmpf ogt, %6, %7 : vector<16x128xf32>
    %cst_6 = arith.constant 3.000000e-01 : f32
    %9 = vector.broadcast %cst_6 : f32 to vector<16x128xf32>
    %10 = arith.mulf %9, %6 : vector<16x128xf32>
    %11 = arith.select %8, %6, %10 : vector<16x128xi1>, vector<16x128xf32>
    %12 = arith.truncf %11 : vector<16x128xf32> to vector<16x128xbf16>
    %c0_7 = arith.constant 0 : index
    %c0_8 = arith.constant 0 : index
    %c0_9 = arith.constant 0 : index
    %13 = vector.load %arg3[%c0_7, %c0_8, %c0_9] : memref<3x128x128xbf16, #tpu.memory_space<vmem>>, vector<1x128x128xbf16>
    %14 = vector.shape_cast %13 : vector<1x128x128xbf16> to vector<128x128xbf16>
    %cst_10 = arith.constant dense<0.000000e+00> : vector<16x128xf32>
    %15 = tpu.matmul %12, %14, %cst_10 {dimension_numbers = #tpu.dot_dimension_numbers<[1], [0], [0], [1], [0, 0, 1, 1], [], []>} : vector<16x128xbf16>, vector<128x128xbf16>, vector<16x128xf32> -> vector<16x128xf32>
    %c1 = arith.constant 1 : index
    %c0_11 = arith.constant 0 : index
    %16 = vector.load %arg4[%c1, %c0_11] : memref<4x128xf32, #tpu.memory_space<vmem>>, vector<1x128xf32>
    %17 = vector.broadcast %16 : vector<1x128xf32> to vector<16x128xf32>
    %18 = arith.addf %15, %17 : vector<16x128xf32>
    %cst_12 = arith.constant 0.000000e+00 : f32
    %19 = vector.broadcast %cst_12 : f32 to vector<16x128xf32>
    %20 = arith.cmpf ogt, %18, %19 : vector<16x128xf32>
    %cst_13 = arith.constant 3.000000e-01 : f32
    %21 = vector.broadcast %cst_13 : f32 to vector<16x128xf32>
    %22 = arith.mulf %21, %18 : vector<16x128xf32>
    %23 = arith.select %20, %18, %22 : vector<16x128xi1>, vector<16x128xf32>
    %24 = arith.truncf %23 : vector<16x128xf32> to vector<16x128xbf16>
    %c1_14 = arith.constant 1 : index
    %c0_15 = arith.constant 0 : index
    %c0_16 = arith.constant 0 : index
    %25 = vector.load %arg3[%c1_14, %c0_15, %c0_16] : memref<3x128x128xbf16, #tpu.memory_space<vmem>>, vector<1x128x128xbf16>
    %26 = vector.shape_cast %25 : vector<1x128x128xbf16> to vector<128x128xbf16>
    %cst_17 = arith.constant dense<0.000000e+00> : vector<16x128xf32>
    %27 = tpu.matmul %24, %26, %cst_17 {dimension_numbers = #tpu.dot_dimension_numbers<[1], [0], [0], [1], [0, 0, 1, 1], [], []>} : vector<16x128xbf16>, vector<128x128xbf16>, vector<16x128xf32> -> vector<16x128xf32>
    %c2 = arith.constant 2 : index
    %c0_18 = arith.constant 0 : index
    %28 = vector.load %arg4[%c2, %c0_18] : memref<4x128xf32, #tpu.memory_space<vmem>>, vector<1x128xf32>
    %29 = vector.broadcast %28 : vector<1x128xf32> to vector<16x128xf32>
    %30 = arith.addf %27, %29 : vector<16x128xf32>
    %cst_19 = arith.constant 0.000000e+00 : f32
    %31 = vector.broadcast %cst_19 : f32 to vector<16x128xf32>
    %32 = arith.cmpf ogt, %30, %31 : vector<16x128xf32>
    %cst_20 = arith.constant 3.000000e-01 : f32
    %33 = vector.broadcast %cst_20 : f32 to vector<16x128xf32>
    %34 = arith.mulf %33, %30 : vector<16x128xf32>
    %35 = arith.select %32, %30, %34 : vector<16x128xi1>, vector<16x128xf32>
    %36 = arith.truncf %35 : vector<16x128xf32> to vector<16x128xbf16>
    %c2_21 = arith.constant 2 : index
    %c0_22 = arith.constant 0 : index
    %c0_23 = arith.constant 0 : index
    %37 = vector.load %arg3[%c2_21, %c0_22, %c0_23] : memref<3x128x128xbf16, #tpu.memory_space<vmem>>, vector<1x128x128xbf16>
    %38 = vector.shape_cast %37 : vector<1x128x128xbf16> to vector<128x128xbf16>
    %cst_24 = arith.constant dense<0.000000e+00> : vector<16x128xf32>
    %39 = tpu.matmul %36, %38, %cst_24 {dimension_numbers = #tpu.dot_dimension_numbers<[1], [0], [0], [1], [0, 0, 1, 1], [], []>} : vector<16x128xbf16>, vector<128x128xbf16>, vector<16x128xf32> -> vector<16x128xf32>
    %c3 = arith.constant 3 : index
    %c0_25 = arith.constant 0 : index
    %40 = vector.load %arg4[%c3, %c0_25] : memref<4x128xf32, #tpu.memory_space<vmem>>, vector<1x128xf32>
    %41 = vector.broadcast %40 : vector<1x128xf32> to vector<16x128xf32>
    %42 = arith.addf %39, %41 : vector<16x128xf32>
    %43 = vector.extract_strided_slice %42 {offsets = [0, 0], sizes = [16, 2], strides = [1, 1]} : vector<16x128xf32> to vector<16x2xf32>
    %c0_26 = arith.constant 0 : index
    %c0_27 = arith.constant 0 : index
    %44 = vector.load %arg5[%c0_26, %c0_27] : memref<16x2xf32, #tpu.memory_space<vmem>>, vector<16x2xf32>
    tpu.vector_store %arg5[%c0_26, %c0_27], %43 {strides = array<i32>} : memref<16x2xf32, #tpu.memory_space<vmem>>, vector<16x2xf32>,
    return
  }
  func.func @transform_0(%arg0: i32) -> (i32, i32) {
    %c0_i32 = arith.constant 0 : i32
    %c0_i32_0 = arith.constant 0 : i32
    return %arg0, %c0_i32 : i32, i32
  }
  func.func @transform_1(%arg0: i32) -> (i32, i32) {
    %c0_i32 = arith.constant 0 : i32
    %c0_i32_0 = arith.constant 0 : i32
    %c0_i32_1 = arith.constant 0 : i32
    return %c0_i32, %c0_i32_0 : i32, i32
  }
  func.func @transform_2(%arg0: i32) -> (i32, i32, i32) {
    %c0_i32 = arith.constant 0 : i32
    %c0_i32_0 = arith.constant 0 : i32
    %c0_i32_1 = arith.constant 0 : i32
    %c0_i32_2 = arith.constant 0 : i32
    return %c0_i32, %c0_i32_0, %c0_i32_1 : i32, i32, i32
  }
  func.func @transform_3(%arg0: i32) -> (i32, i32) {
    %c0_i32 = arith.constant 0 : i32
    %c0_i32_0 = arith.constant 0 : i32
    %c0_i32_1 = arith.constant 0 : i32
    return %c0_i32, %c0_i32_0 : i32, i32
  }
  func.func @transform_4(%arg0: i32) -> (i32, i32) {
    %c0_i32 = arith.constant 0 : i32
    %c0_i32_0 = arith.constant 0 : i32
    return %arg0, %c0_i32 : i32, i32
  }
}

</mosaic_0001>

<bundles_post_ra>
// kernel: discriminator_forward.1
= control target key start
LH: loop header
LB: loop body
LE: loop exit
PB: predicated region body
PF: predicated region fallthrough
CT: control target
= control target key end

     0   :  { %9 = vsyncpa [#allocation3], 0  ;;  %s1434_s0 = inlined_call_operand.hbm [shape: f32[8,784], index: 0, kind: input, shape index: {}]   ;;  %s1435_s1 = inlined_call_operand.hbm [shape: bf16[784,128], index: 1, kind: input, shape index: {}]   ;;  %s1436_s2 = inlined_call_operand.hbm [shape: bf16[3,128,128], index: 2, kind: input, shape index: {}]   ;;  %s1437_s3 = inlined_call_operand.hbm [shape: f32[4,128], index: 3, kind: input, shape index: {}]   ;;  %s1438_s4 = inlined_call_operand.vmem [shape: f32[8,2], index: 4, kind: output, shape index: {}]  }
   0x1   :  { %10 = vsyncpa [#allocation5], 0 }
   0x2   :  { %11 = vsyncpa [#allocation8], 0  ;;  %s29_s17 = sshll.u32 %s1435_s1, 4  ;;  %s30_s17 = int_to_ptr.hbm [resolvable:$true] %s29_s17 }
   0x3   :  { %15 = vsyncadd [#allocation3], 896  ;;  %s1386_s18 = smov [#allocation4]   ;;  %s16_s22 = sshll.u32 %s1434_s0, 4  ;;  %s17_s22 = int_to_ptr.hbm [resolvable:$true] %s16_s22 }
   0x4   :  { %s31_s19 = sshll.u32 %s1386_s18, 4  ;;  %s1387_s23 = smov 64   ;;  %s32_s19 = int_to_ptr.vmem [resolvable:$true] %s31_s19 }
   0x5   :  { %s1388_s24 = smov 4   ;;  %s1389_s25 = smov [#allocation2]  }
   0x6   :  { %37 = dma.hbm_to_vmem [thread:$0]  %s30_s17, 6272, %s32_s19, [#allocation5], %s1387_s23, %s1387_s23, %s1388_s24  }
   0x7   :  { %s18_s26 = sshll.u32 %s1389_s25, 4  ;;  %s1390_s27 = smov 896   ;;  %s19_s26 = int_to_ptr.vmem [resolvable:$true] %s18_s26 }
   0x8   :  { %s1391_s28 = smov 56   ;;  %s42_s30 = sshll.u32 %s1436_s2, 4  ;;  %s43_s30 = int_to_ptr.hbm [resolvable:$true] %s42_s30 }
   0x9   :  { %24 = dma.hbm_to_vmem [thread:$0]  %s17_s22, 896, %s19_s26, [#allocation3], %s1390_s27, %s1390_s27, %s1391_s28  }
   0xa   :  { %s1392_s5 = smov [#allocation6]   ;;  %s56_s8 = sshll.u32 %s1437_s3, 4  ;;  %s57_s8 = int_to_ptr.hbm [resolvable:$true] %s56_s8 }
   0xb   :  { %s44_s6 = sshll.u32 %s1392_s5, 4  ;;  %s1393_s9 = smov [#allocation7]   ;;  %s45_s6 = int_to_ptr.vmem [resolvable:$true] %s44_s6 }
   0xc   :  { %50 = dma.hbm_to_vmem [thread:$0]  %s43_s30, 3072, %s45_s6, [#allocation5], %s1387_s23, %s1387_s23, %s1388_s24  }
   0xd   :  { %s58_s10 = sshll.u32 %s1393_s9, 4  ;;  %s59_s10 = int_to_ptr.vmem [resolvable:$true] %s58_s10 }
   0xe   :  { %61 = dma.hbm_to_vmem [thread:$0]  %s57_s8, 64, %s59_s10, [#allocation8]  }
   0xf   :  { %1380 = dma.done.wait [#allocation3], 1792  }
  0x10   :  { %1381 = vsyncadd [#allocation3], 4294965504 }
  0x11   :  { %1382 = dma.done.wait [#allocation5], 9344  }
  0x12   :  { %1383 = vsyncadd [#allocation5], 4294957952 }
  0x13   :  { %1384 = dma.done.wait [#allocation8], 64  }
  0x14   :  { %1385 = vsyncadd [#allocation8], 4294967232  ;;  %v1206_v0 = vld [vmem:[#allocation4 + $0x38] sm:$0xff]  ;;  %v1205_v4 = vld [vmem:[#allocation4 + $0x30] sm:$0xff]  ;;  %vm494_vm0 = vcmask 130048   ;;  %vm859_vm7 = vcmask 15360  }
  0x15   :  { %v1214_v1 = vld [vmem:[#allocation4 + $0x78] sm:$0xff]  ;;  %498 = vmatpush.bf16.msra.mxu0 %v1206_v0  ;;  %v1213_v5 = vld [vmem:[#allocation4 + $0x70] sm:$0xff]  ;;  %v1204_v8 = vld [vmem:[#allocation4 + $0x28] sm:$0xff] }
  0x16   :  { %v1222_v2 = vld [vmem:[#allocation4 + $0xb8] sm:$0xff]  ;;  %512 = vmatpush.bf16.msra.mxu1 %v1214_v1  ;;  %v1221_v6 = vld [vmem:[#allocation4 + $0xb0] sm:$0xff]  ;;  %v1212_v9 = vld [vmem:[#allocation4 + $0x68] sm:$0xff] }
  0x17   :  { %v1230_v3 = vld [vmem:[#allocation4 + $0xf8] sm:$0xff]  ;;  %526 = vmatpush.bf16.msra.mxu2 %v1222_v2  ;;  %v1229_v7 = vld [vmem:[#allocation4 + $0xf0] sm:$0xff]  ;;  %v1220_v10 = vld [vmem:[#allocation4 + $0xa8] sm:$0xff] }
  0x18   :  { %540 = vmatpush.bf16.msra.mxu3 %v1230_v3  ;;  %v1228_v11 = vld [vmem:[#allocation4 + $0xe8] sm:$0xff]  ;;  %v1203_v12 = vld [vmem:[#allocation4 + $0x20] sm:$0xff]  ;;  %v1202_v16 = vld [vmem:[#allocation4 + $0x18] sm:$0xff] }
  0x19   :  { %499 = vmatpush.bf16.msra.mxu0 %v1205_v4  ;;  %v1211_v13 = vld [vmem:[#allocation4 + $0x60] sm:$0xff]  ;;  %v1210_v17 = vld [vmem:[#allocation4 + $0x58] sm:$0xff]  ;;  %v1201_v20 = vld [vmem:[#allocation4 + $0x10] sm:$0xff] }
  0x1a   :  { %513 = vmatpush.bf16.msra.mxu1 %v1213_v5  ;;  %v1219_v14 = vld [vmem:[#allocation4 + $0xa0] sm:$0xff]  ;;  %v1218_v18 = vld [vmem:[#allocation4 + $0x98] sm:$0xff]  ;;  %v1209_v21 = vld [vmem:[#allocation4 + $0x50] sm:$0xff] }
  0x1b   :  { %527 = vmatpush.bf16.msra.mxu2 %v1221_v6  ;;  %v1227_v15 = vld [vmem:[#allocation4 + $0xe0] sm:$0xff]  ;;  %v1226_v19 = vld [vmem:[#allocation4 + $0xd8] sm:$0xff]  ;;  %v1217_v22 = vld [vmem:[#allocation4 + $0x90] sm:$0xff] }
  0x1c   :  { %541 = vmatpush.bf16.msra.mxu3 %v1229_v7  ;;  %v1225_v23 = vld [vmem:[#allocation4 + $0xd0] sm:$0xff]  ;;  %v1200_v24 = vld [vmem:[#allocation4 + $0x8] sm:$0xff]  ;;  %v1199_v28 = vld [vmem:[#allocation4] sm:$0xff] }
  0x1d   :  { %500 = vmatpush.bf16.msra.mxu0 %v1204_v8  ;;  %v1208_v25 = vld [vmem:[#allocation4 + $0x48] sm:$0xff]  ;;  %v1207_v29 = vld [vmem:[#allocation4 + $0x40] sm:$0xff]  ;;  %v79_v30 = vld [vmem:[#allocation2] sm:$0xff] }
  0x1e   :  { %514 = vmatpush.bf16.msra.mxu1 %v1212_v9  ;;  %v1216_v26 = vld [vmem:[#allocation4 + $0x88] sm:$0xff]  ;;  %v80_v32 = vld [vmem:[#allocation2 + $0x8] sm:$0xff]  ;;  %v87_v33 = vld [vmem:[#allocation2 + $0x40] sm:$0xff] }
  0x1f   :  { %528 = vmatpush.bf16.msra.mxu2 %v1220_v10  ;;  %v1224_v27 = vld [vmem:[#allocation4 + $0xc8] sm:$0xff]  ;;  %v1238_v34 = vld [vmem:[#allocation4 + $0x138] sm:$0xff]  ;;  %v1215_v36 = vld [vmem:[#allocation4 + $0x80] sm:$0xff]  ;;  %v94_v43 = vpack.c.bf16 %v87_v33, %v80_v32 }
  0x20   :  { %542 = vmatpush.bf16.msra.mxu3 %v1228_v11  ;;  %v86_v31 = vld [vmem:[#allocation2 + $0x38] sm:$0xff]  ;;  %v1246_v35 = vld [vmem:[#allocation4 + $0x178] sm:$0xff]  ;;  %v1223_v37 = vld [vmem:[#allocation4 + $0xc0] sm:$0xff] }
  0x21   :  { %501 = vmatpush.bf16.msra.mxu0 %v1203_v12  ;;  %v81_v38 = vld [vmem:[#allocation2 + $0x10] sm:$0xff]  ;;  %v88_v39 = vld [vmem:[#allocation2 + $0x48] sm:$0xff]  ;;  %v93_v40 = vpack.c.bf16 %v86_v31, %v79_v30  ;;  %v82_v41 = vld [vmem:[#allocation2 + $0x18] sm:$0xff] }
  0x22   :  { %515 = vmatpush.bf16.msra.mxu1 %v1211_v13  ;;  %v89_v42 = vld [vmem:[#allocation2 + $0x50] sm:$0xff]  ;;  %v1237_v45 = vld [vmem:[#allocation4 + $0x130] sm:$0xff]  ;;  %v95_v47 = vpack.c.bf16 %v88_v39, %v81_v38  ;;  %v1236_v49 = vld [vmem:[#allocation4 + $0x128] sm:$0xff] }
  0x23   :  { %529 = vmatpush.bf16.msra.mxu2 %v1219_v14  ;;  %v1247_v44 = vld [vmem:[#allocation4 + $0x180] sm:$0xff]  ;;  %v1245_v46 = vld [vmem:[#allocation4 + $0x170] sm:$0xff]  ;;  %v96_v48 = vpack.c.bf16 %v89_v42, %v82_v41  ;;  %v1244_v50 = vld [vmem:[#allocation4 + $0x168] sm:$0xff] }
  0x24   :  { %543 = vmatpush.bf16.msra.mxu3 %v1227_v15  ;;  %v1235_v51 = vld [vmem:[#allocation4 + $0x120] sm:$0xff]  ;;  %v1234_v53 = vld [vmem:[#allocation4 + $0x118] sm:$0xff]  ;;  %v1233_v57 = vld [vmem:[#allocation4 + $0x110] sm:$0xff] }
  0x25   :  { %502 = vmatpush.bf16.msra.mxu0 %v1202_v16  ;;  %v1243_v52 = vld [vmem:[#allocation4 + $0x160] sm:$0xff]  ;;  %v1242_v54 = vld [vmem:[#allocation4 + $0x158] sm:$0xff]  ;;  %v1241_v58 = vld [vmem:[#allocation4 + $0x150] sm:$0xff] }
  0x26   :  { %516 = vmatpush.bf16.msra.mxu1 %v1210_v17  ;;  %v85_v55 = vld [vmem:[#allocation2 + $0x30] sm:$0xff]  ;;  %v92_v56 = vld [vmem:[#allocation2 + $0x68] sm:$0xff]  ;;  %v1232_v60 = vld [vmem:[#allocation4 + $0x108] sm:$0xff] }
  0x27   :  { %530 = vmatpush.bf16.msra.mxu2 %v1218_v18  ;;  %v99_v59 = vpack.c.bf16 %v92_v56, %v85_v55  ;;  %v1240_v61 = vld [vmem:[#allocation4 + $0x148] sm:$0xff]  ;;  %v1231_v62 = vld [vmem:[#allocation4 + $0x100] sm:$0xff]  ;;  %v83_v0 = vld [vmem:[#allocation2 + $0x20] sm:$0xff] }
  0x28   :  { %544 = vmatpush.bf16.msra.mxu3 %v1226_v19  ;;  %v1239_v63 = vld [vmem:[#allocation4 + $0x140] sm:$0xff]  ;;  %v90_v1 = vld [vmem:[#allocation2 + $0x58] sm:$0xff]  ;;  %v84_v2 = vld [vmem:[#allocation2 + $0x28] sm:$0xff] }
  0x29   :  { %503 = vmatpush.bf16.msra.mxu0 %v1201_v20  ;;  %v91_v3 = vld [vmem:[#allocation2 + $0x60] sm:$0xff]  ;;  %v97_v4 = vpack.c.bf16 %v90_v1, %v83_v0  ;;  %v1255_v6 = vld [vmem:[#allocation6 + $0x38] sm:$0xff]  ;;  %v1254_v7 = vld [vmem:[#allocation6 + $0x30] sm:$0xff] }
  0x2a   :  { %517 = vmatpush.bf16.msra.mxu1 %v1209_v21  ;;  %v98_v5 = vpack.c.bf16 %v91_v3, %v84_v2  ;;  %v1253_v8 = vld [vmem:[#allocation6 + $0x28] sm:$0xff]  ;;  %v1252_v9 = vld [vmem:[#allocation6 + $0x20] sm:$0xff]  ;;  %v1251_v10 = vld [vmem:[#allocation6 + $0x18] sm:$0xff] }
  0x2b   :  { %531 = vmatpush.bf16.msra.mxu2 %v1217_v22  ;;  %v1250_v11 = vld [vmem:[#allocation6 + $0x10] sm:$0xff]  ;;  %v1249_v12 = vld [vmem:[#allocation6 + $0x8] sm:$0xff]  ;;  %v1280_v16 = vld [vmem:[#allocation7] ss:$0 sm:$0xff] }
  0x2c   :  { %545 = vmatpush.bf16.msra.mxu3 %v1225_v23  ;;  %v1248_v17 = vld [vmem:[#allocation6] sm:$0xff]  ;;  %v1263_v19 = vld [vmem:[#allocation6 + $0x78] sm:$0xff]  ;;  %v1262_v20 = vld [vmem:[#allocation6 + $0x70] sm:$0xff] }
  0x2d   :  { %504 = vmatpush.bf16.msra.mxu0 %v1200_v24  ;;  %v1256_v55 = vld [vmem:[#allocation6 + $0x40] sm:$0xff]  ;;  %v1271_v56 = vld [vmem:[#allocation6 + $0xb8] sm:$0xff] }
  0x2e   :  { %518 = vmatpush.bf16.msra.mxu1 %v1208_v25 }
  0x2f   :  { %532 = vmatpush.bf16.msra.mxu2 %v1216_v26  ;;  %v1261_v26 = vld [vmem:[#allocation6 + $0x68] sm:$0xff] }
  0x30   :  { %546 = vmatpush.bf16.msra.mxu3 %v1224_v27 }
  0x31   :  { %505 = vmatpush.bf16.msra.mxu0 %v1199_v28 }
  0x32   :  { %519 = vmatpush.bf16.msra.mxu1 %v1207_v29  ;;  %v1260_v29 = vld [vmem:[#allocation6 + $0x60] sm:$0xff] }
  0x33   :  { %533 = vmatpush.bf16.msra.mxu2 %v1215_v36 }
  0x34   :  { %547 = vmatpush.bf16.msra.mxu3 %v1223_v37  ;;  %506 = vmatmul.bf16.vlgmr.msra.gmra.mxu0 %v93_v40 }
  0x35   :  { %554 = vmatpush.bf16.msrb.mxu0 %v1238_v34  ;;  %520 = vmatmul.bf16.vlgmr.msra.gmra.mxu1 %v94_v43 }
  0x36   :  { %568 = vmatpush.bf16.msrb.mxu1 %v1246_v35  ;;  %534 = vmatmul.bf16.vlgmr.msra.gmra.mxu2 %v95_v47 }
  0x37   :  { %589 = vmatpush.bf16.msrb.mxu2 %v1247_v44  ;;  %548 = vmatmul.bf16.vlgmr.msra.gmra.mxu3 %v96_v48 }
  0x38   :  { %669 = vmatpush.bf16.msrb.mxu3 %v1255_v6  ;;  %v1267_v6 = vld [vmem:[#allocation6 + $0x98] sm:$0xff] }
  0x39   :  { %555 = vmatpush.bf16.msrb.mxu0 %v1237_v45 }
  0x3a   :  { %569 = vmatpush.bf16.msrb.mxu1 %v1245_v46 }
  0x3b   :  { %757 = vmatpush.bf16.msra.mxu2 %v1263_v19 }
  0x3c   :  { %670 = vmatpush.bf16.msrb.mxu3 %v1254_v7  ;;  %v1266_v7 = vld [vmem:[#allocation6 + $0x90] sm:$0xff] }
  0x3d   :  { %556 = vmatpush.bf16.msrb.mxu0 %v1236_v49 }
  0x3e   :  { %570 = vmatpush.bf16.msrb.mxu1 %v1244_v50 }
  0x3f   :  { %758 = vmatpush.bf16.msra.mxu2 %v1262_v20  ;;  %v1283_v20 = vld [vmem:[#allocation7 + $0x3] ss:$0 sm:$0xff] }
  0x40   :  { %671 = vmatpush.bf16.msrb.mxu3 %v1253_v8  ;;  %v1265_v8 = vld [vmem:[#allocation6 + $0x88] sm:$0xff] }
  0x41   :  { %557 = vmatpush.bf16.msrb.mxu0 %v1235_v51 }
  0x42   :  { %571 = vmatpush.bf16.msrb.mxu1 %v1243_v52  ;;  %v1259_v52 = vld [vmem:[#allocation6 + $0x58] sm:$0xff] }
  0x43   :  { %759 = vmatpush.bf16.msra.mxu2 %v1261_v26 }
  0x44   :  { %672 = vmatpush.bf16.msrb.mxu3 %v1252_v9  ;;  %v1264_v9 = vld [vmem:[#allocation6 + $0x80] sm:$0xff] }
  0x45   :  { %558 = vmatpush.bf16.msrb.mxu0 %v1234_v53  ;;  %v1258_v53 = vld [vmem:[#allocation6 + $0x50] sm:$0xff] }
  0x46   :  { %572 = vmatpush.bf16.msrb.mxu1 %v1242_v54  ;;  %1102 = vmatmul.msk.bf16.vlgmr.msrb.gmra.mxu2 %vm494_vm0, %v99_v59  ;;  %v1257_v54 = vld [vmem:[#allocation6 + $0x48] sm:$0xff]  ;;  %v1268_v59 = vld [vmem:[#allocation6 + $0xa0] sm:$0xff] }
  0x47   :  { %760 = vmatpush.bf16.msra.mxu2 %v1260_v29 }
  0x48   :  { %673 = vmatpush.bf16.msrb.mxu3 %v1251_v10 }
  0x49   :  { %559 = vmatpush.bf16.msrb.mxu0 %v1233_v57  ;;  %v1270_v57 = vld [vmem:[#allocation6 + $0xb0] sm:$0xff] }
  0x4a   :  { %573 = vmatpush.bf16.msrb.mxu1 %v1241_v58  ;;  %v1269_v58 = vld [vmem:[#allocation6 + $0xa8] sm:$0xff] }
  0x4b   :  { %761 = vmatpush.bf16.msra.mxu2 %v1259_v52 }
  0x4c   :  { %674 = vmatpush.bf16.msrb.mxu3 %v1250_v11  ;;  %v1282_v11 = vld [vmem:[#allocation7 + $0x2] ss:$0 sm:$0xff] }
  0x4d   :  { %560 = vmatpush.bf16.msrb.mxu0 %v1232_v60 }
  0x4e   :  { %574 = vmatpush.bf16.msrb.mxu1 %v1240_v61  ;;  %v1281_v61 = vld [vmem:[#allocation7 + $0x1] ss:$0 sm:$0xff] }
  0x4f   :  { %762 = vmatpush.bf16.msra.mxu2 %v1258_v53 }
  0x50   :  { %675 = vmatpush.bf16.msrb.mxu3 %v1249_v12 }
  0x51   :  { %561 = vmatpush.bf16.msrb.mxu0 %v1231_v62 }
  0x52   :  { %575 = vmatpush.bf16.msrb.mxu1 %v1239_v63 }
  0x53   :  { %763 = vmatpush.bf16.msra.mxu2 %v1257_v54 }
  0x54   :  { %562 = vmatmul.bf16.vlgmr.msrb.gmra.mxu0 %v97_v4  ;;  %676 = vmatpush.bf16.msrb.mxu3 %v1248_v17 }
  0x55   :  { %576 = vmatmul.bf16.vlgmr.msrb.gmra.mxu1 %v98_v5  ;;  %845 = vmatpush.bf16.msra.mxu0 %v1271_v56 }
  0x57   :  { %764 = vmatpush.bf16.msra.mxu2 %v1256_v55 }
  0x59   :  { %846 = vmatpush.bf16.msra.mxu0 %v1270_v57 }
  0x5d   :  { %847 = vmatpush.bf16.msra.mxu0 %v1269_v58 }
  0x61   :  { %848 = vmatpush.bf16.msra.mxu0 %v1268_v59 }
  0x65   :  { %849 = vmatpush.bf16.msra.mxu0 %v1267_v6 }
  0x69   :  { %850 = vmatpush.bf16.msra.mxu0 %v1266_v7 }
  0x6d   :  { %851 = vmatpush.bf16.msra.mxu0 %v1265_v8 }
  0x71   :  { %852 = vmatpush.bf16.msra.mxu0 %v1264_v9 }
  0xb1   :  { %v507_v13 = vpop.f32.mrf.mxu0 }
  0xb2   :  { %v521_v14 = vpop.f32.mrf.mxu1  ;;  %v508_v18 = vadd.f32 %v1280_v16, %v507_v13 }
  0xb4   :  { %v522_v21 = vadd.f32 %v521_v14, %v508_v18 }
  0xb9   :  { %v535_v15 = vpop.f32.mrf.mxu2  ;;  %v509_v22 = vpop.f32.mrf.mxu0 }
  0xba   :  { %v523_v23 = vpop.f32.mrf.mxu1  ;;  %v549_v25 = vpop.f32.mrf.mxu3  ;;  %v536_v27 = vadd.f32 %v535_v15, %v522_v21  ;;  %v510_v28 = vadd.f32 %v1280_v16, %v509_v22 }
  0xbc   :  { %v550_v30 = vadd.f32 %v549_v25, %v536_v27  ;;  %v524_v31 = vadd.f32 %v523_v23, %v510_v28 }
  0xc1   :  { %v537_v24 = vpop.f32.mrf.mxu2 }
  0xc2   :  { %v538_v36 = vadd.f32 %v537_v24, %v524_v31  ;;  %v551_v37 = vpop.f32.mrf.mxu3 }
  0xc4   :  { %v552_v39 = vadd.f32 %v551_v37, %v538_v36 }
  0xc9   :  { %v591_v35 = vpop.f32.mrf.mxu2 }
  0xd1   :  { %v563_v32 = vpop.f32.mrf.mxu0  ;;  %v593_v45 = vpop.f32.mrf.mxu2 }
  0xd2   :  { %v577_v33 = vpop.f32.mrf.mxu1  ;;  %v564_v34 = vadd.f32 %v563_v32, %v550_v30 }
  0xd4   :  { %v578_v38 = vadd.f32 %v577_v33, %v564_v34 }
  0xd6   :  { %v592_v41 = vadd.f32 %v591_v35, %v578_v38 }
  0xd8   :  { %v598_v46 = vmul.f32 0.3, %v592_v41  ;;  %vm596_vm1 = vcmp.gt.f32.partialorder %v592_v41, 0.0 }
  0xd9   :  { %v565_v40 = vpop.f32.mrf.mxu0 }
  0xda   :  { %v566_v42 = vadd.f32 %v565_v40, %v552_v39  ;;  %v579_v43 = vpop.f32.mrf.mxu1  ;;  %v600_v49 = vsel %vm596_vm1, %v592_v41, %v598_v46 }
  0xdc   :  { %v580_v44 = vadd.f32 %v579_v43, %v566_v42 }
  0xde   :  { %v594_v47 = vadd.f32 %v593_v45, %v580_v44 }
  0xe0   :  { %vm597_vm2 = vcmp.gt.f32.partialorder %v594_v47, 0.0  ;;  %v599_v48 = vmul.f32 0.3, %v594_v47 }
  0xe2   :  { %v601_v50 = vsel %vm597_vm2, %v594_v47, %v599_v48 }
  0xe3   :  { %v602_v51 = vpack.c.bf16 %v601_v50, %v600_v49 }
  0xe5   :  { %677 = vmatmul.bf16.vlgmr.msrb.gmra.mxu3 %v602_v51 }
 0x168   :  { %v678_v60 = vpop.f32.mrf.mxu3 }
 0x169   :  { %v679_v62 = vadd.f32 %v1281_v61, %v678_v60 }
 0x16b   :  { %v685_v0 = vmul.f32 0.3, %v679_v62  ;;  %vm683_vm3 = vcmp.gt.f32.partialorder %v679_v62, 0.0 }
 0x16d   :  { %v687_v3 = vsel %vm683_vm3, %v679_v62, %v685_v0 }
 0x170   :  { %v680_v63 = vpop.f32.mrf.mxu3 }
 0x171   :  { %v681_v1 = vadd.f32 %v1281_v61, %v680_v63 }
 0x173   :  { %vm684_vm4 = vcmp.gt.f32.partialorder %v681_v1, 0.0  ;;  %v686_v2 = vmul.f32 0.3, %v681_v1 }
 0x175   :  { %v688_v4 = vsel %vm684_vm4, %v681_v1, %v686_v2 }
 0x176   :  { %v689_v5 = vpack.c.bf16 %v688_v4, %v687_v3 }
 0x178   :  { %765 = vmatmul.bf16.vlgmr.msra.gmra.mxu2 %v689_v5 }
 0x1fb   :  { %v766_v10 = vpop.f32.mrf.mxu2 }
 0x1fc   :  { %v767_v12 = vadd.f32 %v1282_v11, %v766_v10 }
 0x1fe   :  { %v773_v14 = vmul.f32 0.3, %v767_v12  ;;  %vm771_vm5 = vcmp.gt.f32.partialorder %v767_v12, 0.0 }
 0x200   :  { %v775_v17 = vsel %vm771_vm5, %v767_v12, %v773_v14 }
 0x203   :  { %v768_v13 = vpop.f32.mrf.mxu2 }
 0x204   :  { %v769_v15 = vadd.f32 %v1282_v11, %v768_v13 }
 0x206   :  { %vm772_vm6 = vcmp.gt.f32.partialorder %v769_v15, 0.0  ;;  %v774_v16 = vmul.f32 0.3, %v769_v15 }
 0x208   :  { %v776_v18 = vsel %vm772_vm6, %v769_v15, %v774_v16 }
 0x209   :  { %v777_v19 = vpack.c.bf16 %v776_v18, %v775_v17 }
 0x20b   :  { %853 = vmatmul.bf16.vlgmr.msra.gmra.mxu0 %v777_v19 }
 0x288   :  { %v854_v21 = vpop.f32.mrf.mxu0 }
 0x289   :  { %v855_v22 = vadd.f32 %v1283_v20, %v854_v21 }
 0x28b   :  { %860 = vst.msk [vmem:[#allocation9] sm:$0xff] %vm859_vm7, %v855_v22 }
 0x290   :  { %v856_v23 = vpop.f32.mrf.mxu0 }
 0x292   :  { %v892_v24 = vld [vmem:[#allocation9] sm:$0xff] }
 0x293   :  { %893 = vst [vmem:[%s1438_s4] sm:$0xff] %v892_v24 }
 0x294   :  { %899 = vsyncpa [#allocation3], 1 }
 0x295   :  { %900 = vsyncpa [#allocation5], 1 }
 0x296   :  { %901 = vsyncpa [#allocation8], 1 }

</bundles_post_ra>
